<compile_context>
chip_gen: v6e
topology: v6e:2x2x1
jax: 0.10.0
libtpu: 0.0.40
codegen_flags: <defaults>
</compile_context>

<pallas_src>
import functools

import numpy as np
import jax
import jax.numpy as jnp
from jax import lax
from jax.experimental import pallas as pl
from jax.experimental.pallas import tpu as pltpu


# --------------------------------------------------------------------------
# small helpers
# --------------------------------------------------------------------------
def _resident_spec(shape):
    """BlockSpec for an array kept whole / resident across every grid step."""
    zeros = (0,) * len(shape)
    return pl.BlockSpec(shape, lambda *_args, _z=zeros: _z)


def _maybe_vmem_limit(est_bytes):
    """Explicit scoped-VMEM limit only when the estimate exceeds the v5e default."""
    if est_bytes <= 12 * 1024 * 1024:
        return None
    return int(min(max(2 * est_bytes, 32 * 1024 * 1024), 64 * 1024 * 1024))


def _pick_time_chunk(T, cap=128):
    """Largest chunk <= cap that divides T and is sublane-aligned; cdiv fallback otherwise."""
    if T <= cap:
        return T
    start = cap - (cap % 8)
    for c in range(start, 0, -8):
        if T % c == 0:
            return c
    return cap  # ragged tail: handled by cdiv grid + masked writeback


def _pick_readout_tile(T, N, D, budget_bytes=8 * 1024 * 1024):
    """Tile over T sized from a VMEM budget; lane-aligned output block when tiling."""
    per_row = 4 * (2 * N * D + 2 * N)  # double-buffered input rows + output cols
    cap = max(1, budget_bytes // max(per_row, 1))
    if T <= cap:
        return T
    tb = min(cap, 512)
    return max(128, (tb // 128) * 128)


# --------------------------------------------------------------------------
# Kernel 1: readout of reservoir-1 state, node-major output:
#   out[n, t] = sum_d R[t, n, d] * W[n, d]
# --------------------------------------------------------------------------
def readout_nt_kernel(r_ref, w_ref, o_ref):
    r = r_ref[...]                                   # (TB, N, D)
    w = w_ref[...]                                   # (N, D)
    out_tn = jnp.sum(r * w[None, :, :], axis=-1)     # (TB, N)
    o_ref[...] = out_tn.T                            # (N, TB)


def readout_nt(r_state, w_out):
    T, N, D = r_state.shape
    tb = _pick_readout_tile(T, N, D)
    est = 4 * (2 * tb * N * D + N * D + 2 * N * tb)
    return pl.pallas_call(
        readout_nt_kernel,
        out_shape=jax.ShapeDtypeStruct((N, T), jnp.float32),
        grid=(pl.cdiv(T, tb),),
        in_specs=[pl.BlockSpec((tb, N, D), lambda i: (i, 0, 0)),
                  pl.BlockSpec((N, D), lambda i: (0, 0))],
        out_specs=pl.BlockSpec((N, tb), lambda i: (0, i)),
        compiler_params=pltpu.CompilerParams(
            dimension_semantics=("parallel",),
            vmem_limit_bytes=_maybe_vmem_limit(est)),
    )(r_state, w_out)


# --------------------------------------------------------------------------
# Kernel 2: node MLP + batchnorm + edge expansion + edge MLP -> (N, N, 2) logits,
# tiled over receiver tiles (grid axis "parallel").
#   logits[i, j, :] = fc_cat(relu(fc_out([senders_j, receivers_i]))) for edge (rec i, send j)
# TODO(synk): channel-first (N_V, 2, N_V) lane-dense logits need a feature-major edge
#             expansion (per-receiver transposes otherwise); kept (N_V, N_V, 2) here.
# --------------------------------------------------------------------------
def edge_mlp_kernel(x_ref, fcw_ref, fcb_ref, g_ref, be_ref,
                    ws_ref, wr_ref, fob_ref, catw_ref, catb_ref,
                    o_ref, r_scratch, *, r_tile, unroll):
    x16 = x_ref[...].astype(jnp.bfloat16)                                 # (N, T)
    h = jnp.dot(x16, fcw_ref[...].astype(jnp.bfloat16),
                preferred_element_type=jnp.float32) + fcb_ref[...]
    h = jnp.maximum(h, 0.0)                                               # relu

    # BatchNorm1d (training mode): batch statistics over nodes, biased var, eps=1e-5.
    mean = jnp.mean(h, axis=0, keepdims=True)
    var = jnp.mean(jnp.square(h - mean), axis=0, keepdims=True)
    h = (h - mean) * lax.rsqrt(var + 1e-5) * g_ref[...] + be_ref[...]
    h16 = h.astype(jnp.bfloat16)

    # Hoisted fc_out halves (senders / receivers projections), fc_out bias folded into recv.
    send_proj = jnp.dot(h16, ws_ref[...].astype(jnp.bfloat16),
                        preferred_element_type=jnp.float32)               # (N, emb)
    r_scratch[...] = jnp.dot(h16, wr_ref[...].astype(jnp.bfloat16),
                             preferred_element_type=jnp.float32) + fob_ref[...]

    catw16 = catw_ref[...].astype(jnp.bfloat16)                           # (emb, 2)
    catb = catb_ref[...]                                                  # (1, 2)
    r0 = pl.program_id(0) * r_tile

    def body(i, carry):
        r_i = r_scratch[pl.ds(r0 + i, 1), :]                              # (1, emb)
        h2 = jnp.maximum(send_proj + r_i, 0.0)                            # (N, emb)
        o_ref[i] = jnp.dot(h2.astype(jnp.bfloat16), catw16,
                           preferred_element_type=jnp.float32) + catb     # (N, 2)
        return carry

    lax.fori_loop(0, r_tile, body, 0, unroll=unroll)


def edge_mlp(x_in, params):
    N, _T = x_in.shape
    emb = params["fc_b"].shape[1]
    ws = params["fc_out_w"][:emb, :]      # senders half of fc_out weight
    wr = params["fc_out_w"][emb:, :]      # receivers half of fc_out weight

    # receiver tile: a divisor of N (<= 16) so output blocks tile exactly
    r_tile = 1
    for c in range(min(N, 16), 0, -1):
        if N % c == 0:
            r_tile = c
            break
    unroll = max(1, min(8, r_tile))

    args = (x_in, params["fc_w"], params["fc_b"], params["bn_gamma"], params["bn_beta"],
            ws, wr, params["fc_out_b"], params["fc_cat_w"], params["fc_cat_b"])
    kernel = functools.partial(edge_mlp_kernel, r_tile=r_tile, unroll=unroll)
    est = 4 * (sum(int(np.prod(a.shape)) for a in args) + 3 * N * emb + 2 * r_tile * N * 2)
    return pl.pallas_call(
        kernel,
        out_shape=jax.ShapeDtypeStruct((N, N, 2), jnp.float32),
        grid=(N // r_tile,),
        in_specs=[_resident_spec(a.shape) for a in args],
        out_specs=pl.BlockSpec((r_tile, N, 2), lambda r: (r, 0, 0)),
        scratch_shapes=[pltpu.VMEM((N, emb), jnp.float32)],
        compiler_params=pltpu.CompilerParams(
            dimension_semantics=("parallel",),
            vmem_limit_bytes=_maybe_vmem_limit(est)),
    )(*args)


# --------------------------------------------------------------------------
# Kernel 3: reservoir recurrence fused with the second readout (transposed state).
#   S_0 = 0
#   S_t = tanh( RnT @ S_{t-1} @ A + win_col * x_row_t + b )      (rho, delta pre-folded)
#   out[t, n] = sum_d S_t[d, n] * WoutT[d, n]
# Grid iterates T-chunks sequentially ("arbitrary"); the carried (D, N) state lives in VMEM
# scratch; only the (T, N) readout is written to HBM (one (1, N) row per step).
# --------------------------------------------------------------------------
def reservoir_kernel(x_ref, a_ref, rnT_ref, win_ref, woutT_ref, o_ref,
                     state_ref, *, b, t_chunk, unroll):
    gi = pl.program_id(0)

    a16 = a_ref[...].astype(jnp.bfloat16)       # (N, N) InputNetwork (0/1 -> lossless bf16)
    rnT16 = rnT_ref[...].astype(jnp.bfloat16)   # (D, D) rho * R_network^T
    win = win_ref[...]                          # (D, 1) delta * W_in^T
    woutT = woutT_ref[...]                      # (D, N) W_out2^T

    def step(t, carry):
        prev = state_ref[...]                                               # (D, N) f32
        inner = jnp.dot(rnT16, prev.astype(jnp.bfloat16),
                        preferred_element_type=jnp.float32)                 # (D, N)
        pre = jnp.dot(inner.astype(jnp.bfloat16), a16,
                      preferred_element_type=jnp.float32)                   # (D, N)
        x_row = x_ref[pl.ds(t, 1), :]                                       # (1, N)
        new = jnp.tanh(pre + win * x_row + b)                               # f32 tanh (v5e)
        state_ref[...] = new
        # fused second readout: one lane-dense row per step, no chunk scratch
        o_ref[pl.ds(t, 1), :] = jnp.sum(new * woutT, axis=0, keepdims=True)
        return carry

    @pl.when(gi == 0)
    def _first_chunk():
        # torch sets R[0] = 0, so output row 0 is exactly zero and the loop starts at t=1.
        state_ref[...] = jnp.zeros_like(state_ref)
        o_ref[pl.ds(0, 1), :] = jnp.zeros((1, o_ref.shape[1]), o_ref.dtype)
        lax.fori_loop(1, t_chunk, step, 0, unroll=unroll)

    @pl.when(gi != 0)
    def _later_chunks():
        lax.fori_loop(0, t_chunk, step, 0, unroll=unroll)


def run_reservoir(a_mat, rnT_scaled, train_data, win_col, woutT, *, b):
    T, N = train_data.shape
    D = rnT_scaled.shape[0]
    t_chunk = _pick_time_chunk(T, cap=128)
    unroll = max(1, min(8, t_chunk - 1))
    est = 4 * (N * N + D * D + D + D * N + D * N) + 4 * 2 * 2 * (t_chunk * N)
    kernel = functools.partial(reservoir_kernel, b=float(b), t_chunk=t_chunk, unroll=unroll)
    return pl.pallas_call(
        kernel,
        out_shape=jax.ShapeDtypeStruct((T, N), jnp.float32),
        grid=(pl.cdiv(T, t_chunk),),
        in_specs=[
            pl.BlockSpec((t_chunk, N), lambda i: (i, 0)),   # train data (lane-dense chunk)
            pl.BlockSpec((N, N), lambda i: (0, 0)),         # InputNetwork (resident)
            pl.BlockSpec((D, D), lambda i: (0, 0)),         # rho * R_network^T (resident)
            pl.BlockSpec((D, 1), lambda i: (0, 0)),         # delta * W_in^T (resident)
            pl.BlockSpec((D, N), lambda i: (0, 0)),         # W_out2^T (resident)
        ],
        out_specs=pl.BlockSpec((t_chunk, N), lambda i: (i, 0)),
        scratch_shapes=[pltpu.VMEM((D, N), jnp.float32)],    # carried transposed state
        compiler_params=pltpu.CompilerParams(
            dimension_semantics=("arbitrary",),              # serial recurrence
            vmem_limit_bytes=_maybe_vmem_limit(est)),
    )(train_data, a_mat, rnT_scaled, win_col, woutT)


# --------------------------------------------------------------------------
# Parameters + full forward pass (glue + kernels)
# --------------------------------------------------------------------------
def init_params(key, N_V, Dr, ltrain, emb=100):
    ks = jax.random.split(key, 9)

    def unif(k, shape, fan_in):
        s = 1.0 / np.sqrt(fan_in)
        return jax.random.uniform(k, shape, jnp.float32, -s, s)

    # NOTE: the torch module inits W_out1/W_out2 to zeros; small random values are used so
    # the downstream kernels compute something non-trivial in this demo.
    return dict(
        W_out1=0.1 * jax.random.normal(ks[0], (N_V, Dr), jnp.float32),
        W_out2=0.1 * jax.random.normal(ks[1], (N_V, Dr), jnp.float32),
        W_in=jax.random.normal(ks[2], (1, Dr), jnp.float32),
        R_network=(1.0 / np.sqrt(Dr)) * jax.random.normal(ks[3], (Dr, Dr), jnp.float32),
        fc_w=unif(ks[4], (ltrain, emb), ltrain),        # stored (in, out)
        fc_b=jnp.zeros((1, emb), jnp.float32),
        bn_gamma=jnp.ones((1, emb), jnp.float32),
        bn_beta=jnp.zeros((1, emb), jnp.float32),
        fc_out_w=unif(ks[5], (2 * emb, emb), 2 * emb),  # stored (in, out)
        fc_out_b=unif(ks[6], (1, emb), 2 * emb),
        fc_cat_w=unif(ks[7], (emb, 2), emb),            # stored (in, out)
        fc_cat_b=unif(ks[8], (1, 2), emb),
    )


def reservoir2_forward(params, R_state1, train_data, key, *, rho, delta, b):
    T, N_V, Dr = R_state1.shape

    # 1) readout of reservoir-1 state, node-major (N_V, T)
    x_in = readout_nt(R_state1, params["W_out1"])

    # 2) node/edge MLP -> per-edge logits; logits[i, j] = edge(receiver i, sender j)
    logits = edge_mlp(x_in, params)                               # (N_V, N_V, 2)

    # 3) gumbel-softmax (hard, straight-through) + diagonal mask -- plain-JAX glue.
    # TODO(synk): torch.rand-based gumbel noise kept outside the kernels (no pltpu PRNG here).
    u = jax.random.uniform(key, logits.shape, jnp.float32)
    gumbel = -jnp.log(-jnp.log(u + 1e-10) + 1e-10)
    y_soft = jax.nn.softmax((logits + gumbel) / 0.5, axis=-1)
    k = jnp.argmax(y_soft, axis=-1)
    y_hard = jax.nn.one_hot(k, 2, dtype=jnp.float32)
    y = (y_hard - y_soft) + y_soft                                # straight-through forward
    input_network = jnp.where(jnp.eye(N_V, dtype=bool), 0.0, y[..., 0])

    # 4+5) reservoir recurrence fused with the second readout (transposed state layout);
    #      rho folded into R_network^T, delta folded into W_in^T.
    out = run_reservoir(
        input_network,                         # A^T = InputNetwork (right-multiplied)
        rho * params["R_network"].T,           # (Dr, Dr)
        train_data,                            # (T, N_V) lane-dense
        delta * params["W_in"].T,              # (Dr, 1)
        params["W_out2"].T,                    # (Dr, N_V)
        b=b)
    return out                                                    # (T, N_V)


if __name__ == "__main__":
    N_V, Dr, ltrain = 4, 32, 16
    rho, delta, b = 0.9, 0.5, 0.1

    key = jax.random.PRNGKey(0)
    kp, kr, kt, kg = jax.random.split(key, 4)

    params = init_params(kp, N_V, Dr, ltrain)
    R_state1 = jax.random.normal(kr, (ltrain, N_V, Dr), jnp.float32)
    train_data = jax.random.normal(kt, (ltrain, N_V), jnp.float32)

    out = reservoir2_forward(params, R_state1, train_data, kg, rho=rho, delta=delta, b=b)
    out = jax.block_until_ready(out)
    assert out.shape == (ltrain, N_V) and out.dtype == jnp.float32
    assert bool(jnp.all(jnp.isfinite(out)))
    print("KERNEL_OK")
</pallas_src>

<mosaic_0001>
module attributes {stable_mosaic.version = 11 : i64} {
  func.func @readout_nt_kernel(%arg0: i32, %arg1: memref<16x4x32xf32, #tpu.memory_space<vmem>>, %arg2: memref<4x32xf32, #tpu.memory_space<vmem>>, %arg3: memref<4x16xf32, #tpu.memory_space<vmem>>) attributes {dimension_semantics = [#tpu.dimension_semantics<parallel>], iteration_bounds = array<i64: 1>, scalar_prefetch = 0 : i64, scratch_operands = 0 : i64, tpu.core_type = #tpu.core_type<tc>, window_params = [{transform_indices = @transform_0, window_bounds = array<i64: 16, 4, 32>}, {pipeline_mode = #tpu.pipeline_mode<synchronous>, transform_indices = @transform_1, window_bounds = array<i64: 4, 32>}, {transform_indices = @transform_2, window_bounds = array<i64: 4, 16>}]} {
    %c0 = arith.constant 0 : index
    %c0_0 = arith.constant 0 : index
    %c0_1 = arith.constant 0 : index
    %0 = vector.load %arg1[%c0, %c0_0, %c0_1] : memref<16x4x32xf32, #tpu.memory_space<vmem>>, vector<16x4x32xf32>
    %c0_2 = arith.constant 0 : index
    %c0_3 = arith.constant 0 : index
    %1 = vector.load %arg2[%c0_2, %c0_3] : memref<4x32xf32, #tpu.memory_space<vmem>>, vector<4x32xf32>
    %2 = vector.shape_cast %1 : vector<4x32xf32> to vector<1x4x32xf32>
    %3 = vector.broadcast %2 : vector<1x4x32xf32> to vector<16x4x32xf32>
    %4 = arith.mulf %0, %3 : vector<16x4x32xf32>
    %cst = arith.constant dense<0.000000e+00> : vector<16x4xf32>
    %5 = vector.multi_reduction <add>, %4, %cst [2] : vector<16x4x32xf32> to vector<16x4xf32>
    %6 = tpu.transpose %5, [1, 0] : vector<16x4xf32> -> vector<4x16xf32>
    %c0_4 = arith.constant 0 : index
    %c0_5 = arith.constant 0 : index
    %7 = vector.load %arg3[%c0_4, %c0_5] : memref<4x16xf32, #tpu.memory_space<vmem>>, vector<4x16xf32>
    tpu.vector_store %arg3[%c0_4, %c0_5], %6 {strides = array<i32>} : memref<4x16xf32, #tpu.memory_space<vmem>>, vector<4x16xf32>,
    return
  }
  func.func @transform_0(%arg0: i32) -> (i32, i32, i32) {
    %c0_i32 = arith.constant 0 : i32
    %c0_i32_0 = arith.constant 0 : i32
    %c0_i32_1 = arith.constant 0 : i32
    return %arg0, %c0_i32, %c0_i32_0 : i32, i32, i32
  }
  func.func @transform_1(%arg0: i32) -> (i32, i32) {
    %c0_i32 = arith.constant 0 : i32
    %c0_i32_0 = arith.constant 0 : i32
    %c0_i32_1 = arith.constant 0 : i32
    return %c0_i32, %c0_i32_0 : i32, i32
  }
  func.func @transform_2(%arg0: i32) -> (i32, i32) {
    %c0_i32 = arith.constant 0 : i32
    %c0_i32_0 = arith.constant 0 : i32
    return %c0_i32, %arg0 : i32, i32
  }
}

</mosaic_0001>

<bundles_post_ra>
// kernel: tpu_custom_call.1
= control target key start
LH: loop header
LB: loop body
LE: loop exit
PB: predicated region body
PF: predicated region fallthrough
CT: control target
= control target key end

     0   :  { %7 = vsyncpa [#allocation3], 0  ;;  %s406_s0 = inlined_call_operand.hbm [shape: f32[16,4,32], index: 0, kind: input, shape index: {}]   ;;  %s407_s1 = inlined_call_operand.hbm [shape: f32[4,32], index: 1, kind: input, shape index: {}]   ;;  %s408_s2 = inlined_call_operand.hbm [shape: f32[4,16], index: 2, kind: output, shape index: {}]  }
   0x1   :  { %8 = vsyncpa [#allocation6], 0 }
   0x2   :  { %9 = vsyncpa [#allocation4], 0  ;;  %s347_s9 = smov [#allocation2]  }
   0x3   :  { %s15_s10 = sshll.u32 %s347_s9, 4  ;;  %s16_s10 = int_to_ptr.vmem [resolvable:$true] %s15_s10 }
   0x4   :  { %s289_s11 = scalar_lea.vmem %s16_s10, 1024  ;;  %p294_p1 = scmp.lt.s32.totalorder %s16_s10, %s16_s10 }
   0x5   :  { %p290_p0 = scmp.ne.s32.totalorder %s16_s10, %s289_s11  ;;  %p295_p2 = scmp.lt.s32.totalorder %s289_s11, %s289_s11 }
   0x7   :  { %p296_p3 = por %p295_p2, %p294_p1 }
   0x9   :  { %p297_p4 = pnand %p296_p3, %p290_p0 }
   0xb   :  { %300 = shalt.err (!%p297_p4)
}
   0xc   :  { %s348_s12 = smov 64   ;;  %s349_s13 = smov 4  }
   0xd   :  { %21 = dma.hbm_to_vmem [thread:$0]  %s406_s0, 1024, %s16_s10, [#allocation3], %s348_s12, %s348_s12, %s349_s13  }
   0xe   :  { %s350_s16 = smov [#allocation5]  }
   0xf   :  { %s28_s17 = sshll.u32 %s350_s16, 4  ;;  %s29_s17 = int_to_ptr.vmem [resolvable:$true] %s28_s17 }
  0x10   :  { %s309_s18 = scalar_lea.vmem %s29_s17, 64  ;;  %p314_p6 = scmp.lt.s32.totalorder %s29_s17, %s29_s17 }
  0x11   :  { %p310_p5 = scmp.ne.s32.totalorder %s29_s17, %s309_s18  ;;  %p315_p7 = scmp.lt.s32.totalorder %s309_s18, %s309_s18 }
  0x13   :  { %p316_p8 = por %p315_p7, %p314_p6 }
  0x15   :  { %p317_p9 = pnand %p316_p8, %p310_p5 }
  0x17   :  { %320 = shalt.err (!%p317_p9)
}
  0x18   :  { %31 = dma.hbm_to_vmem [thread:$0]  %s407_s1, 64, %s29_s17, [#allocation6]  }
  0x19   :  { %341 = dma.done.wait [#allocation3], 1024  }
  0x1a   :  { %342 = vsyncadd [#allocation3], 4294966272 }
  0x1b   :  { %343 = dma.done.wait [#allocation6], 64  }
  0x1c   :  { %344 = vsyncadd [#allocation6], 4294967232  ;;  %vm71_vm0 = vcmask 257024   ;;  %v40_v0 = vld [vmem:[#allocation2 + $0x8] sm:$0xf]  ;;  %v136_v51 = vlaneseq  ;;  %vm202_vm1 = vcmask 1041409  }
  0x1d   :  { %v54_v1 = vld [vmem:[#allocation5] sm:$0xf]  ;;  %v41_v5 = vld [vmem:[#allocation2 + $0xc] sm:$0xf]  ;;  %v39_v6 = vld [vmem:[#allocation2 + $0x4] sm:$0xf] }
  0x1e   :  { %v38_v2 = vld [vmem:[#allocation2] sm:$0xf]  ;;  %v57_v3 = vmul.f32 %v54_v1, %v40_v0  ;;  %v58_v7 = vmul.f32 %v54_v1, %v41_v5  ;;  %v56_v8 = vmul.f32 %v54_v1, %v39_v6  ;;  %v47_v9 = vld [vmem:[#allocation2 + $0x24] sm:$0xf]  ;;  %v48_v17 = vld [vmem:[#allocation2 + $0x28] sm:$0xf] }
  0x1f   :  { %v55_v4 = vmul.f32 %v54_v1, %v38_v2  ;;  %v46_v10 = vld [vmem:[#allocation2 + $0x20] sm:$0xf]  ;;  %v64_v15 = vmul.f32 %v54_v1, %v47_v9  ;;  %v42_v18 = vld [vmem:[#allocation2 + $0x10] sm:$0xf]  ;;  %v65_v21 = vmul.f32 %v54_v1, %v48_v17  ;;  %v49_v23 = vld [vmem:[#allocation2 + $0x2c] sm:$0xf] }
  0x20   :  { %v78_v11 = vsel %vm71_vm0, %v57_v3, 0.0  ;;  %v81_v13 = vsel %vm71_vm0, %v58_v7, 0.0  ;;  %v75_v14 = vsel %vm71_vm0, %v56_v8, 0.0  ;;  %v63_v16 = vmul.f32 %v54_v1, %v46_v10  ;;  %v43_v24 = vld [vmem:[#allocation2 + $0x14] sm:$0xf]  ;;  %s351_s0 = smov [#allocation7]  }
  0x21   :  { %v72_v12 = vsel %vm71_vm0, %v55_v4, 0.0  ;;  %79 = vadd.xlane.f32.xlu1 %v78_v11  ;;  %v99_v19 = vsel %vm71_vm0, %v64_v15, 0.0  ;;  %v59_v22 = vmul.f32 %v54_v1, %v42_v18  ;;  %v102_v25 = vsel %vm71_vm0, %v65_v21, 0.0  ;;  %v50_v29 = vld [vmem:[#allocation2 + $0x30] sm:$0xf]  ;;  %s265_s1 = sshll.u32 %s351_s0, 4  ;;  %s266_s1 = int_to_ptr.vmem [resolvable:$true] %s265_s1 }
  0x22   :  { %73 = vadd.xlane.f32.xlu0 %v72_v12  ;;  %v96_v20 = vsel %vm71_vm0, %v63_v16, 0.0  ;;  %v66_v27 = vmul.f32 %v54_v1, %v49_v23  ;;  %v60_v28 = vmul.f32 %v54_v1, %v43_v24  ;;  %v44_v30 = vld [vmem:[#allocation2 + $0x18] sm:$0xf]  ;;  %v67_v33 = vmul.f32 %v54_v1, %v50_v29  ;;  %v51_v35 = vld [vmem:[#allocation2 + $0x34] sm:$0xf]  ;;  %s321_s21 = scalar_lea.vmem %s266_s1, 64  ;;  %p326_p11 = scmp.lt.s32.totalorder %s266_s1, %s266_s1 }
  0x23   :  { %v84_v26 = vsel %vm71_vm0, %v59_v22, 0.0  ;;  %v61_v34 = vmul.f32 %v54_v1, %v44_v30  ;;  %v45_v36 = vld [vmem:[#allocation2 + $0x1c] sm:$0xf]  ;;  %v68_v39 = vmul.f32 %v54_v1, %v51_v35  ;;  %v52_v41 = vld [vmem:[#allocation2 + $0x38] sm:$0xf]  ;;  %v137_v54 = vand.u32 127, %v136_v51  ;;  %p322_p10 = scmp.ne.s32.totalorder %s266_s1, %s321_s21  ;;  %p327_p12 = scmp.lt.s32.totalorder %s321_s21, %s321_s21 }
  0x24   :  { %v105_v31 = vsel %vm71_vm0, %v66_v27, 0.0  ;;  %v87_v32 = vsel %vm71_vm0, %v60_v28, 0.0  ;;  %v108_v37 = vsel %vm71_vm0, %v67_v33, 0.0  ;;  %v62_v40 = vmul.f32 %v54_v1, %v45_v36  ;;  %v53_v42 = vld [vmem:[#allocation2 + $0x3c] sm:$0xf] }
  0x25   :  { %82 = vadd.xlane.f32.xlu1 %v81_v13  ;;  %v90_v38 = vsel %vm71_vm0, %v61_v34, 0.0  ;;  %v111_v43 = vsel %vm71_vm0, %v68_v39, 0.0  ;;  %v69_v45 = vmul.f32 %v54_v1, %v52_v41  ;;  %v70_v46 = vmul.f32 %v54_v1, %v53_v42  ;;  %p328_p13 = por %p327_p12, %p326_p11 }
  0x26   :  { %76 = vadd.xlane.f32.xlu0 %v75_v14  ;;  %v93_v44 = vsel %vm71_vm0, %v62_v40, 0.0  ;;  %v139_v55 = vshrl.u32 %v136_v51, 7  ;;  %vm204_vm2 = vcmask 1042434   ;;  %vm206_vm3 = vcmask 1043459  }
  0x27   :  { %v114_v47 = vsel %vm71_vm0, %v69_v45, 0.0  ;;  %v117_v48 = vsel %vm71_vm0, %v70_v46, 0.0  ;;  %vm208_vm4 = vcmask 1044484   ;;  %vm210_vm5 = vcmask 1045509   ;;  %p329_p0 = pnand %p328_p13, %p322_p10 }
  0x28   :  { %v140_v58 = vsub.s32 %v137_v54, %v139_v55  ;;  %vm212_vm6 = vcmask 1046534   ;;  %vm214_vm7 = vcmask 1047559   ;;  %vm257_vm8 = vcmask 125952  }
  0x29   :  { %100 = vadd.xlane.f32.xlu1 %v99_v19 }
  0x2a   :  { %97 = vadd.xlane.f32.xlu0 %v96_v20 }
  0x2d   :  { %103 = vadd.xlane.f32.xlu1 %v102_v25 }
  0x2e   :  { %85 = vadd.xlane.f32.xlu0 %v84_v26 }
  0x31   :  { %106 = vadd.xlane.f32.xlu1 %v105_v31 }
  0x32   :  { %88 = vadd.xlane.f32.xlu0 %v87_v32 }
  0x35   :  { %109 = vadd.xlane.f32.xlu1 %v108_v37 }
  0x36   :  { %91 = vadd.xlane.f32.xlu0 %v90_v38 }
  0x39   :  { %112 = vadd.xlane.f32.xlu1 %v111_v43 }
  0x3a   :  { %94 = vadd.xlane.f32.xlu0 %v93_v44 }
  0x3d   :  { %118 = vadd.xlane.f32.xlu1 %v117_v48 }
  0x3e   :  { %115 = vadd.xlane.f32.xlu0 %v114_v47 }
  0xaa   :  { %v80_v49 = vpop.xlane.xlu1 %79 }
  0xab   :  { %v74_v50 = vpop.xlane.xlu0 %73  ;;  %v149_v2 = vrot.slane %v80_v49, %v140_v58 }
  0xac   :  { %v141_v62 = vrot.slane %v74_v50, %v140_v58 }
  0xae   :  { %v83_v52 = vpop.xlane.xlu1 %82 }
  0xaf   :  { %v77_v53 = vpop.xlane.xlu0 %76  ;;  %v153_v3 = vrot.slane %v83_v52, %v140_v58 }
  0xb0   :  { %v145_v61 = vrot.slane %v77_v53, %v140_v58 }
  0xb2   :  { %v101_v56 = vpop.xlane.xlu1 %100  ;;  %v203_v1 = vsel %vm202_vm1, %v145_v61, %v141_v62 }
  0xb3   :  { %v98_v57 = vpop.xlane.xlu0 %97  ;;  %v205_v4 = vsel %vm204_vm2, %v149_v2, %v203_v1  ;;  %v177_v9 = vrot.slane %v101_v56, %v140_v58 }
  0xb4   :  { %v173_v10 = vrot.slane %v98_v57, %v140_v58  ;;  %v207_v13 = vsel %vm206_vm3, %v153_v3, %v205_v4 }
  0xb6   :  { %v104_v59 = vpop.xlane.xlu1 %103  ;;  %v216_v21 = vsel %vm202_vm1, %v177_v9, %v173_v10 }
  0xb7   :  { %v86_v60 = vpop.xlane.xlu0 %85  ;;  %v181_v12 = vrot.slane %v104_v59, %v140_v58 }
  0xb8   :  { %v157_v5 = vrot.slane %v86_v60, %v140_v58 }
  0xb9   :  { %v217_v24 = vsel %vm204_vm2, %v181_v12, %v216_v21 }
  0xba   :  { %v107_v63 = vpop.xlane.xlu1 %106  ;;  %v209_v14 = vsel %vm208_vm4, %v157_v5, %v207_v13 }
  0xbb   :  { %v89_v0 = vpop.xlane.xlu0 %88  ;;  %v185_v15 = vrot.slane %v107_v63, %v140_v58 }
  0xbc   :  { %v161_v8 = vrot.slane %v89_v0, %v140_v58 }
  0xbd   :  { %v218_v26 = vsel %vm206_vm3, %v185_v15, %v217_v24 }
  0xbe   :  { %v110_v6 = vpop.xlane.xlu1 %109  ;;  %v211_v20 = vsel %vm210_vm5, %v161_v8, %v209_v14 }
  0xbf   :  { %v92_v7 = vpop.xlane.xlu0 %91  ;;  %v189_v18 = vrot.slane %v110_v6, %v140_v58 }
  0xc0   :  { %v165_v11 = vrot.slane %v92_v7, %v140_v58 }
  0xc1   :  { %v219_v29 = vsel %vm208_vm4, %v189_v18, %v218_v26 }
  0xc2   :  { %v113_v16 = vpop.xlane.xlu1 %112  ;;  %v213_v23 = vsel %vm212_vm6, %v165_v11, %v211_v20 }
  0xc3   :  { %v95_v17 = vpop.xlane.xlu0 %94  ;;  %v193_v22 = vrot.slane %v113_v16, %v140_v58 }
  0xc4   :  { %v169_v19 = vrot.slane %v95_v17, %v140_v58 }
  0xc5   :  { %v220_v32 = vsel %vm210_vm5, %v193_v22, %v219_v29 }
  0xc6   :  { %v215_v25 = vsel %vm214_vm7, %v169_v19, %v213_v23  ;;  %v119_v28 = vpop.xlane.xlu1 %118 }
  0xc7   :  { %225 = vxpose.xlu0.b32.start [1/2] (short) (narrow) %v215_v25, 8  ;;  %v116_v27 = vpop.xlane.xlu0 %115  ;;  %v201_v31 = vrot.slane %v119_v28, %v140_v58 }
  0xc8   :  { %v197_v30 = vrot.slane %v116_v27, %v140_v58 }
  0xca   :  { %v221_v33 = vsel %vm212_vm6, %v197_v30, %v220_v32 }
  0xcb   :  { %v222_v34 = vsel %vm214_vm7, %v201_v31, %v221_v33 }
  0xcc   :  { %226 = vxpose.xlu0.b32.end [2/2] (short) (narrow) %v222_v34, 8 }
 0x144   :  { %v241_v35 = vpop.trf.xlu0 }
 0x145   :  { %258 = vst.msk [vmem:[#allocation7] sm:$0xf] %vm257_vm8, %v241_v35 }
 0x146   :  { %332 = shalt.err (!%p329_p0)
}
 0x147   :  { %268 = dma.vmem_to_hbm [thread:$0]  %s266_s1, 64, %s408_s2, [#allocation4]  }
 0x148   :  { %345 = dma.done.wait [#allocation4], 64  }
 0x149   :  { %346 = vsyncadd [#allocation4], 4294967232 }
 0x14a   :  { %272 = vsyncpa [#allocation3], 1 }
 0x14b   :  { %273 = vsyncpa [#allocation6], 1 }
 0x14c   :  { %274 = vsyncpa [#allocation4], 1 }

</bundles_post_ra>
